<compile_context>
chip_gen: v6e
topology: v6e:2x2x1
jax: 0.10.0
libtpu: 0.0.40
codegen_flags: <defaults>
</compile_context>

<pallas_src>
import jax
import jax.numpy as jnp
from jax.experimental import pallas as pl
from jax.experimental.pallas import tpu as pltpu

_LANES = 128
_TARGET_BLOCK_BYTES = 2 * 1024 * 1024   # per-input, per-buffer DMA granularity
_VMEM_LIMIT_BYTES = 32 * 1024 * 1024    # 2 in x 2 bufs x 2 MiB + acc << limit


def _round_up(x, m):
    return ((x + m - 1) // m) * m


def _sublane_multiple(dtype):
    # Minimum second-to-last tile dim: f32 -> 8, bf16 -> 16, int8/fp8 -> 32.
    return max(8, 32 // jnp.dtype(dtype).itemsize)


def _detect_num_tensorcores():
    """Trace-time TensorCore count (2 on v7x, 1 on v5e/v6e); safe default 1."""
    try:
        info = pltpu.get_tpu_info()
    except Exception:
        return 1
    for attr in ("num_cores", "num_tensorcores", "tensorcore_count",
                 "cores_per_chip", "core_count"):
        val = getattr(info, attr, None)
        if isinstance(val, int) and val >= 1:
            return val
    return 1


def _make_mse_sum_kernel(tile_rows, blocks_per_split, valid_rows, need_mask):
    """sum((x-t)^2) over the reduction (second) grid axis into an (8,128) acc."""

    def kernel(x_ref, t_ref, out_ref, acc_ref):
        i = pl.program_id(1)

        @pl.when(i == 0)
        def _():
            acc_ref[...] = jnp.zeros_like(acc_ref)

        d = x_ref[...].astype(jnp.float32) - t_ref[...].astype(jnp.float32)
        sq = d * d
        if need_mask:
            p = pl.program_id(0)
            row0 = (p * blocks_per_split + i) * tile_rows
            row_idx = jax.lax.broadcasted_iota(
                jnp.int32, (tile_rows, _LANES), 0) + row0
            # Select (NOT multiply-by-mask): OOB rows may hold NaN/Inf garbage.
            sq = jnp.where(row_idx < valid_rows, sq, 0.0)
        # Fold the (tile_rows,128) block onto one vreg tile: layout-preserving
        # reshape + vreg-wise VPU adds; no full-tile accumulator store.
        acc_ref[...] += jnp.sum(sq.reshape(tile_rows // 8, 8, _LANES), axis=0)

        @pl.when(i == pl.num_programs(1) - 1)
        def _():
            out_ref[0, 0] = jnp.sum(acc_ref[...])

    return kernel


def _content_loss_impl(x, target):
    assert x.shape == target.shape, "x and target must have identical shapes"
    n_elems = x.size
    itemsize = max(jnp.dtype(x.dtype).itemsize, jnp.dtype(target.dtype).itemsize)
    sub = max(_sublane_multiple(x.dtype), _sublane_multiple(target.dtype))

    flat_x = x.reshape(-1)
    flat_t = target.reshape(-1)

    # Lay the elements out as (rows, 128) with as little copying as possible:
    # zero copies when n_elems % 128 == 0 and the input spans >= one sublane tile.
    rem = n_elems % _LANES
    if rem:
        # Rare path: pad by <128 zeros (zeros contribute 0 to the squared sum).
        pad = _LANES - rem
        flat_x = jnp.pad(flat_x, (0, pad))
        flat_t = jnp.pad(flat_t, (0, pad))
    rows = flat_x.size // _LANES
    x2d = flat_x.reshape(rows, _LANES)
    t2d = flat_t.reshape(rows, _LANES)

    if rows < sub:
        # Tiny input (< sub*128 elements): pad rows so one sublane-aligned
        # block fits fully inside the array (negligible copy).
        x2d = jnp.pad(x2d, ((0, sub - rows), (0, 0)))
        t2d = jnp.pad(t2d, ((0, sub - rows), (0, 0)))
        arr_rows = sub
    else:
        arr_rows = rows

    # Block sizing by bytes so the DMA granularity stays ~2 MiB for any dtype;
    # the block never exceeds the array rows (last block may be partial).
    target_rows = max(sub, _TARGET_BLOCK_BYTES // (_LANES * itemsize))
    tile_rows = min(_round_up(target_rows, sub), (arr_rows // sub) * sub)
    nblk = -(-arr_rows // tile_rows)

    # Real multi-TensorCore split (v7x) on the leading grid axis.
    num_cores = _detect_num_tensorcores()
    split = 2 if (num_cores >= 2 and nblk >= 2) else 1
    bps = -(-nblk // split)                 # blocks per parallel slot / core
    covered_rows = split * bps * tile_rows
    need_mask = covered_rows != rows        # partial last block and/or overhang

    def in_map(p, i):
        # Clamp so the overhang step of an odd split re-reads the last real
        # block (contribution fully masked) instead of issuing an OOB window.
        return (jnp.minimum(p * bps + i, nblk - 1), 0)

    kernel = _make_mse_sum_kernel(tile_rows, bps, rows, need_mask)

    if split > 1:
        dim_sem = (pltpu.CORE_PARALLEL, pltpu.ARBITRARY)
    else:
        dim_sem = ("arbitrary", "arbitrary")

    partials = pl.pallas_call(
        kernel,
        out_shape=jax.ShapeDtypeStruct((split, 1), jnp.float32),
        grid_spec=pltpu.PrefetchScalarGridSpec(
            num_scalar_prefetch=0,
            grid=(split, bps),
            in_specs=[
                pl.BlockSpec((tile_rows, _LANES), in_map),
                pl.BlockSpec((tile_rows, _LANES), in_map),
            ],
            out_specs=pl.BlockSpec(
                (1, 1), lambda p, i: (p, 0), memory_space=pltpu.SMEM
            ),
            scratch_shapes=[pltpu.VMEM((8, _LANES), jnp.float32)],
        ),
        compiler_params=pltpu.CompilerParams(
            dimension_semantics=dim_sem,
            vmem_limit_bytes=_VMEM_LIMIT_BYTES,
        ),
        cost_estimate=pl.CostEstimate(
            flops=3 * n_elems,
            transcendentals=0,
            bytes_accessed=n_elems * (jnp.dtype(x.dtype).itemsize
                                      + jnp.dtype(target.dtype).itemsize)
                           + split * 4,
        ),
    )(x2d, t2d)

    loss = jnp.sum(partials) / jnp.float32(n_elems)
    # Module returns its input unchanged; loss is the recorded side value.
    return x, loss


@jax.custom_vjp
def content_loss_forward(x, target):
    """Returns (x, loss) where loss = mean((x - target)**2) over all elements."""
    return _content_loss_impl(x, target)


def _content_loss_fwd(x, target):
    out, loss = _content_loss_impl(x, target)
    return (out, loss), (x, target)


def _content_loss_bwd(residuals, cotangents):
    x, target = residuals
    g_out, g_loss = cotangents
    # d(mse)/dx = 2 * (x - target) / n ; target is detached (zero cotangent).
    scale = jnp.float32(2.0) / jnp.float32(x.size)
    dloss_dx = (x.astype(jnp.float32) - target.astype(jnp.float32)) * scale
    gx = (g_out.astype(jnp.float32) + g_loss * dloss_dx).astype(x.dtype)
    return gx, jnp.zeros_like(target)


content_loss_forward.defvjp(_content_loss_fwd, _content_loss_bwd)

_content_loss_jit = jax.jit(content_loss_forward)


class ContentLoss:
    """JAX/Pallas analogue of the PyTorch ContentLoss module.

    Note: storing `self.loss` is a Python side effect; inside your own jit,
    use `content_loss_forward` functionally instead.
    """

    def __init__(self, target):
        self.target = jax.lax.stop_gradient(target)
        self.loss = None

    def __call__(self, x):
        out, loss = _content_loss_jit(x, self.target)
        self.loss = loss
        return out


if __name__ == "__main__":
    key = jax.random.PRNGKey(0)
    kx, kt = jax.random.split(key)
    # NCHW feature maps: batch=2, channels=4, spatial=16x16
    x = jax.random.normal(kx, (2, 4, 16, 16), dtype=jnp.float32)
    target = jax.random.normal(kt, (2, 4, 16, 16), dtype=jnp.float32)

    module = ContentLoss(target)
    out = module(x)
    jax.block_until_ready(out)
    jax.block_until_ready(module.loss)

    # Forward against plain-JAX reference (zero-copy, 128-aligned path).
    ref_loss = jnp.mean((x - target) ** 2)
    assert jnp.allclose(module.loss, ref_loss, rtol=1e-5, atol=1e-6)
    assert jnp.array_equal(out, x)

    # Gradient w.r.t. the image (the whole point of ContentLoss) via custom_vjp.
    g = jax.grad(lambda img: content_loss_forward(img, target)[1])(x)
    jax.block_until_ready(g)
    g_ref = 2.0 * (x - target) / x.size
    assert jnp.allclose(g, g_ref, rtol=1e-5, atol=1e-6)

    # Ragged element count: exercises the minimal tail pad + in-kernel masking.
    x2 = jax.random.normal(kx, (3, 5, 7, 11), dtype=jnp.float32)
    t2 = jax.random.normal(kt, (3, 5, 7, 11), dtype=jnp.float32)
    _, loss2 = content_loss_forward(x2, t2)
    jax.block_until_ready(loss2)
    assert jnp.allclose(loss2, jnp.mean((x2 - t2) ** 2), rtol=1e-5, atol=1e-6)

    print("KERNEL_OK")
</pallas_src>

<mosaic_0001>
module attributes {stable_mosaic.version = 11 : i64} {
  func.func @kernel(%arg0: i32, %arg1: i32, %arg2: memref<16x128xf32, #tpu.memory_space<vmem>>, %arg3: memref<16x128xf32, #tpu.memory_space<vmem>>, %arg4: memref<1x1xf32, #tpu.memory_space<smem>>, %arg5: memref<8x128xf32, #tpu.memory_space<vmem>>) attributes {dimension_semantics = [#tpu.dimension_semantics<arbitrary>, #tpu.dimension_semantics<arbitrary>], iteration_bounds = array<i64: 1, 1>, scalar_prefetch = 0 : i64, scratch_operands = 1 : i64, tpu.core_type = #tpu.core_type<tc>, window_params = [{transform_indices = @transform_0, window_bounds = array<i64: 16, 128>}, {transform_indices = @transform_1, window_bounds = array<i64: 16, 128>}, {transform_indices = @transform_2, window_bounds = array<i64: 1, 1>}]} {
    %c0_i32 = arith.constant 0 : i32
    %0 = arith.cmpi eq, %arg1, %c0_i32 : i32
    %1 = arith.extui %0 : i1 to i32
    %c0_i32_0 = arith.constant 0 : i32
    %2 = arith.cmpi ne, %1, %c0_i32_0 : i32
    scf.if %2 {
      %cst_10 = arith.constant 0.000000e+00 : f32
      %15 = vector.broadcast %cst_10 : f32 to vector<8x128xf32>
      %c0_11 = arith.constant 0 : index
      %c0_12 = arith.constant 0 : index
      %16 = vector.load %arg5[%c0_11, %c0_12] : memref<8x128xf32, #tpu.memory_space<vmem>>, vector<8x128xf32>
      tpu.vector_store %arg5[%c0_11, %c0_12], %15 {strides = array<i32>} : memref<8x128xf32, #tpu.memory_space<vmem>>, vector<8x128xf32>,
    } else {
    }
    %c0 = arith.constant 0 : index
    %c0_1 = arith.constant 0 : index
    %3 = vector.load %arg2[%c0, %c0_1] : memref<16x128xf32, #tpu.memory_space<vmem>>, vector<16x128xf32>
    %c0_2 = arith.constant 0 : index
    %c0_3 = arith.constant 0 : index
    %4 = vector.load %arg3[%c0_2, %c0_3] : memref<16x128xf32, #tpu.memory_space<vmem>>, vector<16x128xf32>
    %5 = arith.subf %3, %4 : vector<16x128xf32>
    %6 = arith.mulf %5, %5 : vector<16x128xf32>
    %c0_4 = arith.constant 0 : index
    %c0_5 = arith.constant 0 : index
    %7 = vector.load %arg5[%c0_4, %c0_5] : memref<8x128xf32, #tpu.memory_space<vmem>>, vector<8x128xf32>
    %8 = vector.shape_cast %6 : vector<16x128xf32> to vector<2x8x128xf32>
    %cst = arith.constant dense<0.000000e+00> : vector<8x128xf32>
    %9 = vector.multi_reduction <add>, %8, %cst [0] : vector<2x8x128xf32> to vector<8x128xf32>
    %10 = arith.addf %7, %9 : vector<8x128xf32>
    %c0_6 = arith.constant 0 : index
    %c0_7 = arith.constant 0 : index
    %11 = vector.load %arg5[%c0_6, %c0_7] : memref<8x128xf32, #tpu.memory_space<vmem>>, vector<8x128xf32>
    tpu.vector_store %arg5[%c0_6, %c0_7], %10 {strides = array<i32>} : memref<8x128xf32, #tpu.memory_space<vmem>>, vector<8x128xf32>,
    %c0_i32_8 = arith.constant 0 : i32
    %12 = arith.cmpi eq, %arg1, %c0_i32_8 : i32
    %13 = arith.extui %12 : i1 to i32
    %c0_i32_9 = arith.constant 0 : i32
    %14 = arith.cmpi ne, %13, %c0_i32_9 : i32
    scf.if %14 {
      %c0_10 = arith.constant 0 : index
      %c0_11 = arith.constant 0 : index
      %15 = vector.load %arg5[%c0_10, %c0_11] : memref<8x128xf32, #tpu.memory_space<vmem>>, vector<8x128xf32>
      %16 = vector.shape_cast %15 : vector<8x128xf32> to vector<1x8x128xf32>
      %cst_12 = arith.constant dense<0.000000e+00> : vector<1xf32>
      %17 = vector.multi_reduction <add>, %16, %cst_12 [1, 2] : vector<1x8x128xf32> to vector<1xf32>
      %18 = vector.shape_cast %17 : vector<1xf32> to vector<1x1x1xf32>
      %19 = vector.extract %18[0, 0, 0] : f32 from vector<1x1x1xf32>
      %c0_13 = arith.constant 0 : index
      %c0_14 = arith.constant 0 : index
      %20 = memref.load %arg4[%c0_13, %c0_14] : memref<1x1xf32, #tpu.memory_space<smem>>
      memref.store %19, %arg4[%c0_13, %c0_14] : memref<1x1xf32, #tpu.memory_space<smem>>
    } else {
    }
    return
  }
  func.func @transform_0(%arg0: i32, %arg1: i32) -> (i32, i32) {
    %c1_i32 = arith.constant 1 : i32
    %0 = arith.muli %arg0, %c1_i32 : i32
    %1 = arith.addi %0, %arg1 : i32
    %c0_i32 = arith.constant 0 : i32
    %2 = arith.minsi %1, %c0_i32 : i32
    %c0_i32_0 = arith.constant 0 : i32
    %c0_i32_1 = arith.constant 0 : i32
    return %2, %c0_i32_0 : i32, i32
  }
  func.func @transform_1(%arg0: i32, %arg1: i32) -> (i32, i32) {
    %c1_i32 = arith.constant 1 : i32
    %0 = arith.muli %arg0, %c1_i32 : i32
    %1 = arith.addi %0, %arg1 : i32
    %c0_i32 = arith.constant 0 : i32
    %2 = arith.minsi %1, %c0_i32 : i32
    %c0_i32_0 = arith.constant 0 : i32
    %c0_i32_1 = arith.constant 0 : i32
    return %2, %c0_i32_0 : i32, i32
  }
  func.func @transform_2(%arg0: i32, %arg1: i32) -> (i32, i32) {
    %c0_i32 = arith.constant 0 : i32
    %c0_i32_0 = arith.constant 0 : i32
    return %arg0, %c0_i32 : i32, i32
  }
}

</mosaic_0001>

<bundles_post_ra>
// kernel: content_loss_forward.1
= control target key start
LH: loop header
LB: loop body
LE: loop exit
PB: predicated region body
PF: predicated region fallthrough
CT: control target
= control target key end

     0   :  { %s177_s0 = inlined_call_operand.vmem [shape: f32[16,128], index: 0, kind: input, shape index: {}]   ;;  %s178_s1 = inlined_call_operand.vmem [shape: f32[16,128], index: 1, kind: input, shape index: {}]   ;;  %s179_s2 = inlined_call_operand.hbm [shape: f32[1,1], index: 2, kind: output, shape index: {}]  }
   0x1   :  { %v81_v0 = vld [vmem:[%s177_s0] sm:$0xff]  ;;  %v82_v1 = vld [vmem:[%s177_s0 + $0x8] sm:$0xff] }
   0x2   :  { %v83_v2 = vld [vmem:[%s178_s1] sm:$0xff]  ;;  %v84_v3 = vld [vmem:[%s178_s1 + $0x8] sm:$0xff] }
   0x3   :  { %v85_v4 = vsub.f32 %v81_v0, %v83_v2 }
   0x4   :  { %7 = vsyncpa [#allocation4], 0  ;;  %v86_v5 = vsub.f32 %v82_v1, %v84_v3  ;;  %s146_s17 = smov [#allocation3]  }
   0x5   :  { %v87_v6 = vmul.f32 %v85_v4, %v85_v4 }
   0x6   :  { %v88_v7 = vmul.f32 %v86_v5, %v86_v5 }
   0x8   :  { %v90_v8 = vadd.f32 %v88_v7, %v87_v6 }
   0xa   :  { %97 = vadd.xlane.f32.xlu0 %v90_v8 }
  0x93   :  { %v98_v9 = vpop.xlane.xlu0 %97 }
  0x94   :  { %v99_v10 = vrot.slane %v98_v9, 4 }
  0x96   :  { %v100_v11 = vadd.f32 %v99_v10, %v98_v9 }
  0x98   :  { %v101_v12 = vrot.slane %v100_v11, 2 }
  0x9a   :  { %v102_v13 = vadd.f32 %v101_v12, %v100_v11 }
  0x9c   :  { %v103_v14 = vrot.slane %v102_v13, 1 }
  0x9e   :  { %v104_v15 = vadd.f32 %v103_v14, %v102_v13 }
  0xa0   :  { %133 = vpush %v104_v15 }
  0xd1   :  { %s134_s0 = spop %133 }
  0xd2   :  { %107 = sst [smem:[#allocation3]] %s134_s0 }
  0xd3   :  { %115 = dma.smem_to_hbm %s146_s17, 16, %s179_s2, [#allocation4]  }
  0xd4   :  { %144 = dma.done.wait [#allocation4], 16  }
  0xd5   :  { %145 = vsyncadd [#allocation4], 4294967280 }
  0xd6   :  { %119 = sfence }
  0xd7   :  { %120 = vsyncpa [#allocation4], 1 }

</bundles_post_ra>
